<compile_context>
chip_gen: v7x
topology: tpu7x:2x2x1
jax: 0.10.0
libtpu: 0.0.40
codegen_flags: <defaults>
</compile_context>

<pallas_src>
import functools
import math

import jax
import jax.numpy as jnp
from jax.experimental import pallas as pl
from jax.experimental.pallas import tpu as pltpu


def _round_up(x, m):
    return ((x + m - 1) // m) * m


def _cdiv(a, b):
    return -(-a // b)


@functools.lru_cache(maxsize=None)
def _vmem_capacity_bytes():
    """Chip-aware VMEM capacity (v5e/v6e: 128 MiB, v7x: 64 MiB per TC)."""
    try:
        return int(pltpu.get_tpu_info().vmem_capacity_bytes)
    except Exception:
        return 64 << 20  # conservative fallback = smallest (v7x) VMEM


@functools.lru_cache(maxsize=None)
def _pipeline_mode_supported():
    """One-time feature probe for BlockSpec(pipeline_mode=pl.Buffered(k)).

    Runs a trivial 2-step kernel once.  This replaces the previous bare
    try/except around the *real* kernel's execution (which could silently mask
    unrelated bugs and changed resident VMEM without updating the budget).
    """
    if not hasattr(pl, "Buffered"):
        return False
    try:
        def _probe(x_ref, w_ref, o_ref):
            o_ref[...] = x_ref[...] + w_ref[...]

        out = pl.pallas_call(
            _probe,
            out_shape=jax.ShapeDtypeStruct((16, 128), jnp.float32),
            grid=(2,),
            in_specs=[
                pl.BlockSpec((8, 128), lambda i: (i, 0),
                             pipeline_mode=pl.Buffered(3)),
                pl.BlockSpec((8, 128), lambda i: (0, 0),
                             pipeline_mode=pl.Buffered(1)),
            ],
            out_specs=pl.BlockSpec((8, 128), lambda i: (i, 0)),
        )(jnp.zeros((16, 128), jnp.float32), jnp.ones((8, 128), jnp.float32))
        jax.block_until_ready(out)
        return True
    except Exception:
        return False


def _critic_kernel(x_ref,
                   w1_ref, b1_ref,
                   w2_ref, b2_ref,
                   w3_ref, b3_ref,
                   w4_ref, b4_ref,
                   o_ref):
    """Fused 4-layer value-head MLP on one batch tile (weights VMEM-resident).

    bf16 operands feed the MXU with f32 accumulation; each bias+ReLU epilogue
    is fused and immediately cast back to bf16 so only one wide f32 tensor is
    live at a time.  The out_features==1 final layer is a VPU multiply + XLU
    lane reduction (an N=1 matmul would waste almost every MXU output lane).
    """
    cd = w2_ref.dtype
    # Layer 1: (bb, E) @ (E, 2E) -> fused bias + ReLU -> bf16.
    h = jnp.dot(x_ref[...], w1_ref[...], preferred_element_type=jnp.float32)
    h = jnp.maximum(h + b1_ref[...], 0.0).astype(cd)
    # Layer 2: (bb, 2E) @ (2E, E) -> fused bias + ReLU -> bf16.
    h = jnp.dot(h, w2_ref[...], preferred_element_type=jnp.float32)
    h = jnp.maximum(h + b2_ref[...], 0.0).astype(cd)
    # Layer 3: (bb, E) @ (E, E//2); keep f32 -- feeds the VPU final layer.
    h = jnp.dot(h, w3_ref[...], preferred_element_type=jnp.float32)
    h = jnp.maximum(h + b3_ref[...], 0.0)
    # Layer 4 (out_features == 1): VPU multiply + lane reduction.
    w4 = w4_ref[...].astype(jnp.float32)                       # (1, E//2)
    out = jnp.sum(h * w4, axis=-1, keepdims=True) + b4_ref[...]
    o_ref[...] = out.astype(o_ref.dtype)


def _choose_batch_tile(B, E, block_b, itemsize, weight_bytes, bias_bytes,
                       weight_buf, vmem_cap):
    """bf16/MXU-friendly batch tile that fits VMEM and keeps >=2 grid steps."""
    padded16 = _round_up(max(B, 1), 16)
    # Per-row VMEM cost: x buffers (<=3), f32 dot outputs, bf16 relu copies,
    # double-buffered (bb, 1) output.  Deliberately a little conservative.
    per_row = (3 * E * itemsize
               + 4 * (2 * E + E + E // 2)
               + itemsize * (2 * E + E)
               + 2 * 4)
    budget = vmem_cap - weight_buf * (weight_bytes + bias_bytes) - (8 << 20)
    cap = max(16, (max(budget, per_row * 16) // per_row) // 16 * 16)
    bb = max(16, min(_round_up(block_b, 16), cap, padded16))
    # v7x has 2 TensorCores per chip: make sure the "parallel" batch axis has
    # at least 2 grid steps when the batch is big enough to split (negligible
    # cost on single-TC v5e/v6e).
    if padded16 > 32 and _cdiv(padded16, bb) < 2:
        bb = min(bb, _round_up(_cdiv(padded16, 2), 16))
    # Prefer MXU-M-aligned tiles (multiple of 128) when the tile is large.
    if bb >= 128:
        bb = (bb // 128) * 128
    return max(16, (bb // 16) * 16)


def critic_forward(x, params, *, block_b=2048, compute_dtype=jnp.bfloat16):
    """x: (B, E).  params: dict of pre-transposed weights / (1, out) biases."""
    B, E = x.shape
    itemsize = jnp.dtype(compute_dtype).itemsize

    # Compute-precision casts (f32 accumulation happens in-kernel).
    xc = x.astype(compute_dtype)
    w1 = params["w1"].astype(compute_dtype)   # (E,   2E)
    w2 = params["w2"].astype(compute_dtype)   # (2E,  E)
    w3 = params["w3"].astype(compute_dtype)   # (E,   E//2)
    w4 = params["w4"].astype(compute_dtype)   # (1,   E//2)  row vector
    b1 = params["b1"].astype(jnp.float32)     # (1, 2E)
    b2 = params["b2"].astype(jnp.float32)     # (1, E)
    b3 = params["b3"].astype(jnp.float32)     # (1, E//2)
    b4 = params["b4"].astype(jnp.float32)     # (1, 1)

    pipeline_ok = _pipeline_mode_supported()
    weight_buf = 1 if pipeline_ok else 2      # single- vs double-buffered weights

    weight_bytes = (w1.size + w2.size + w3.size + w4.size) * itemsize
    bias_bytes = (b1.size + b2.size + b3.size + b4.size) * 4
    vmem_cap = _vmem_capacity_bytes()

    bb = _choose_batch_tile(B, E, block_b, itemsize, weight_bytes, bias_bytes,
                            weight_buf, vmem_cap)
    padded_b = _round_up(B, bb)
    steps = padded_b // bb
    if padded_b != B:
        xc = jnp.pad(xc, ((0, padded_b - B), (0, 0)))

    x_buf = 3 if (pipeline_ok and steps >= 3) else 2

    # Explicit VMEM budget (includes the buffering multipliers actually used),
    # clamped to the chip's physical VMEM minus headroom.
    vmem_needed = (weight_buf * (weight_bytes + bias_bytes)
                   + x_buf * bb * E * itemsize
                   + 2 * bb * 4
                   + bb * (4 * (2 * E + E + E // 2) + itemsize * (2 * E + E)))
    vmem_limit = max(int(1.3 * vmem_needed) + (4 << 20), 32 << 20)
    vmem_limit = min(vmem_limit, vmem_cap - (2 << 20))
    # TODO(synk): if resident weights ever exceed the per-core VMEM (E >~ 2048
    # on v7x), stream w1/w2 blocks over an extra "arbitrary" hidden-dim grid
    # axis with an f32 accumulator scratch instead of keeping them resident.

    flops = 2 * padded_b * (E * (2 * E) + (2 * E) * E + E * (E // 2) + (E // 2))
    cost = pl.CostEstimate(
        flops=flops,
        transcendentals=0,
        bytes_accessed=int(padded_b * E * itemsize + weight_bytes + bias_bytes
                           + padded_b * 4))

    if pipeline_ok:
        def wspec(shape):
            # Constant index_map across the grid -> single buffer is enough.
            return pl.BlockSpec(shape, lambda i: (0, 0),
                                pipeline_mode=pl.Buffered(1))
        if steps >= 3:
            x_spec = pl.BlockSpec((bb, E), lambda i: (i, 0),
                                  pipeline_mode=pl.Buffered(3))
        else:
            x_spec = pl.BlockSpec((bb, E), lambda i: (i, 0))
    else:
        def wspec(shape):
            return pl.BlockSpec(shape, lambda i: (0, 0))
        x_spec = pl.BlockSpec((bb, E), lambda i: (i, 0))

    out = pl.pallas_call(
        _critic_kernel,
        out_shape=jax.ShapeDtypeStruct((padded_b, 1), jnp.float32),
        grid_spec=pltpu.PrefetchScalarGridSpec(
            num_scalar_prefetch=0,
            grid=(steps,),
            in_specs=[
                x_spec,
                wspec(w1.shape), wspec(b1.shape),
                wspec(w2.shape), wspec(b2.shape),
                wspec(w3.shape), wspec(b3.shape),
                wspec(w4.shape), wspec(b4.shape),
            ],
            out_specs=pl.BlockSpec((bb, 1), lambda i: (i, 0)),
        ),
        compiler_params=pltpu.CompilerParams(
            dimension_semantics=("parallel",),
            vmem_limit_bytes=vmem_limit),
        cost_estimate=cost,
    )(xc, w1, b1, w2, b2, w3, b3, w4, b4)

    return out[:B]


def init_params(key, embed_dim):
    """nn.Linear-style init, U(-1/sqrt(fan_in), +1/sqrt(fan_in)).

    Weights stored transposed (in_features, out_features); last layer stored as
    a (1, embed_dim//2) row vector.  Biases are (1, out_features) float32.
    """
    dims = [
        (embed_dim, embed_dim * 2),
        (embed_dim * 2, embed_dim),
        (embed_dim, embed_dim // 2),
        (embed_dim // 2, 1),
    ]
    params = {}
    for idx, (fan_in, fan_out) in enumerate(dims, start=1):
        key, kw, kb = jax.random.split(key, 3)
        bound = 1.0 / math.sqrt(fan_in)
        w = jax.random.uniform(kw, (fan_in, fan_out), jnp.float32, -bound, bound)
        b = jax.random.uniform(kb, (1, fan_out), jnp.float32, -bound, bound)
        if idx == 4:
            w = w.T                       # (1, embed_dim // 2)
        params[f"w{idx}"] = w
        params[f"b{idx}"] = b
    return params


def reference_forward(x, params, compute_dtype=jnp.bfloat16):
    """Pure-JAX reference mirroring the kernel's compute precision."""
    cd = compute_dtype
    w1 = params["w1"].astype(cd)
    w2 = params["w2"].astype(cd)
    w3 = params["w3"].astype(cd)
    w4 = params["w4"].astype(cd).astype(jnp.float32)
    h = jnp.maximum(jnp.dot(x.astype(cd), w1,
                            preferred_element_type=jnp.float32)
                    + params["b1"], 0.0).astype(cd)
    h = jnp.maximum(jnp.dot(h, w2, preferred_element_type=jnp.float32)
                    + params["b2"], 0.0).astype(cd)
    h = jnp.maximum(jnp.dot(h, w3, preferred_element_type=jnp.float32)
                    + params["b3"], 0.0)
    return jnp.sum(h * w4, axis=-1, keepdims=True) + params["b4"]


if __name__ == "__main__":
    embed_dim = 64
    batch = 200   # deliberately NOT a multiple of the tile -> exercises padding

    key = jax.random.PRNGKey(0)
    key, kx = jax.random.split(key)
    x = jax.random.normal(kx, (batch, embed_dim), jnp.float32)
    params = init_params(key, embed_dim)

    # Default tile policy (splits into >=2 grid steps for the 2-TC case).
    out = jax.block_until_ready(critic_forward(x, params))
    # Small explicit tile -> multi-step grid + Buffered(3) x-pipeline path.
    out_tiled = jax.block_until_ready(critic_forward(x, params, block_b=64))

    ref = reference_forward(x, params)
    assert out.shape == (batch, 1)
    assert out_tiled.shape == (batch, 1)
    assert jnp.allclose(out, ref, atol=1e-2, rtol=1e-2), "mismatch vs reference"
    assert jnp.allclose(out_tiled, ref, atol=1e-2, rtol=1e-2), "tiled mismatch"

    print("KERNEL_OK")
</pallas_src>

<mosaic_0001>
module attributes {stable_mosaic.version = 11 : i64} {
  func.func @_critic_kernel(%arg0: i32, %arg1: memref<112x64xbf16, #tpu.memory_space<vmem>>, %arg2: memref<64x128xbf16, #tpu.memory_space<vmem>>, %arg3: memref<1x128xf32, #tpu.memory_space<vmem>>, %arg4: memref<128x64xbf16, #tpu.memory_space<vmem>>, %arg5: memref<1x64xf32, #tpu.memory_space<vmem>>, %arg6: memref<64x32xbf16, #tpu.memory_space<vmem>>, %arg7: memref<1x32xf32, #tpu.memory_space<vmem>>, %arg8: memref<1x32xbf16, #tpu.memory_space<vmem>>, %arg9: memref<1x1xf32, #tpu.memory_space<vmem>>, %arg10: memref<112x1xf32, #tpu.memory_space<vmem>>) attributes {dimension_semantics = [#tpu.dimension_semantics<parallel>], iteration_bounds = array<i64: 2>, scalar_prefetch = 0 : i64, scratch_operands = 0 : i64, tpu.core_type = #tpu.core_type<tc>, window_params = [{transform_indices = @transform_0, window_bounds = array<i64: 112, 64>}, {pipeline_mode = #tpu.pipeline_mode<synchronous>, transform_indices = @transform_1, window_bounds = array<i64: 64, 128>}, {pipeline_mode = #tpu.pipeline_mode<synchronous>, transform_indices = @transform_2, window_bounds = array<i64: 1, 128>}, {pipeline_mode = #tpu.pipeline_mode<synchronous>, transform_indices = @transform_3, window_bounds = array<i64: 128, 64>}, {pipeline_mode = #tpu.pipeline_mode<synchronous>, transform_indices = @transform_4, window_bounds = array<i64: 1, 64>}, {pipeline_mode = #tpu.pipeline_mode<synchronous>, transform_indices = @transform_5, window_bounds = array<i64: 64, 32>}, {pipeline_mode = #tpu.pipeline_mode<synchronous>, transform_indices = @transform_6, window_bounds = array<i64: 1, 32>}, {pipeline_mode = #tpu.pipeline_mode<synchronous>, transform_indices = @transform_7, window_bounds = array<i64: 1, 32>}, {pipeline_mode = #tpu.pipeline_mode<synchronous>, transform_indices = @transform_8, window_bounds = array<i64: 1, 1>}, {transform_indices = @transform_9, window_bounds = array<i64: 112, 1>}]} {
    %c0 = arith.constant 0 : index
    %c0_0 = arith.constant 0 : index
    %0 = vector.load %arg1[%c0, %c0_0] : memref<112x64xbf16, #tpu.memory_space<vmem>>, vector<112x64xbf16>
    %c0_1 = arith.constant 0 : index
    %c0_2 = arith.constant 0 : index
    %1 = vector.load %arg2[%c0_1, %c0_2] : memref<64x128xbf16, #tpu.memory_space<vmem>>, vector<64x128xbf16>
    %cst = arith.constant dense<0.000000e+00> : vector<112x128xf32>
    %2 = tpu.matmul %0, %1, %cst {dimension_numbers = #tpu.dot_dimension_numbers<[1], [0], [0], [1], [0, 0, 1, 1], [], []>} : vector<112x64xbf16>, vector<64x128xbf16>, vector<112x128xf32> -> vector<112x128xf32>
    %c0_3 = arith.constant 0 : index
    %c0_4 = arith.constant 0 : index
    %3 = vector.load %arg3[%c0_3, %c0_4] : memref<1x128xf32, #tpu.memory_space<vmem>>, vector<1x128xf32>
    %4 = vector.broadcast %3 : vector<1x128xf32> to vector<112x128xf32>
    %5 = arith.addf %2, %4 : vector<112x128xf32>
    %cst_5 = arith.constant 0.000000e+00 : f32
    %6 = vector.broadcast %cst_5 : f32 to vector<112x128xf32>
    %7 = arith.maximumf %5, %6 : vector<112x128xf32>
    %8 = arith.truncf %7 : vector<112x128xf32> to vector<112x128xbf16>
    %c0_6 = arith.constant 0 : index
    %c0_7 = arith.constant 0 : index
    %9 = vector.load %arg4[%c0_6, %c0_7] : memref<128x64xbf16, #tpu.memory_space<vmem>>, vector<128x64xbf16>
    %cst_8 = arith.constant dense<0.000000e+00> : vector<112x64xf32>
    %10 = tpu.matmul %8, %9, %cst_8 {dimension_numbers = #tpu.dot_dimension_numbers<[1], [0], [0], [1], [0, 0, 1, 1], [], []>} : vector<112x128xbf16>, vector<128x64xbf16>, vector<112x64xf32> -> vector<112x64xf32>
    %c0_9 = arith.constant 0 : index
    %c0_10 = arith.constant 0 : index
    %11 = vector.load %arg5[%c0_9, %c0_10] : memref<1x64xf32, #tpu.memory_space<vmem>>, vector<1x64xf32>
    %12 = vector.broadcast %11 : vector<1x64xf32> to vector<112x64xf32>
    %13 = arith.addf %10, %12 : vector<112x64xf32>
    %cst_11 = arith.constant 0.000000e+00 : f32
    %14 = vector.broadcast %cst_11 : f32 to vector<112x64xf32>
    %15 = arith.maximumf %13, %14 : vector<112x64xf32>
    %16 = arith.truncf %15 : vector<112x64xf32> to vector<112x64xbf16>
    %c0_12 = arith.constant 0 : index
    %c0_13 = arith.constant 0 : index
    %17 = vector.load %arg6[%c0_12, %c0_13] : memref<64x32xbf16, #tpu.memory_space<vmem>>, vector<64x32xbf16>
    %cst_14 = arith.constant dense<0.000000e+00> : vector<112x32xf32>
    %18 = tpu.matmul %16, %17, %cst_14 {dimension_numbers = #tpu.dot_dimension_numbers<[1], [0], [0], [1], [0, 0, 1, 1], [], []>} : vector<112x64xbf16>, vector<64x32xbf16>, vector<112x32xf32> -> vector<112x32xf32>
    %c0_15 = arith.constant 0 : index
    %c0_16 = arith.constant 0 : index
    %19 = vector.load %arg7[%c0_15, %c0_16] : memref<1x32xf32, #tpu.memory_space<vmem>>, vector<1x32xf32>
    %20 = vector.broadcast %19 : vector<1x32xf32> to vector<112x32xf32>
    %21 = arith.addf %18, %20 : vector<112x32xf32>
    %cst_17 = arith.constant 0.000000e+00 : f32
    %22 = vector.broadcast %cst_17 : f32 to vector<112x32xf32>
    %23 = arith.maximumf %21, %22 : vector<112x32xf32>
    %c0_18 = arith.constant 0 : index
    %c0_19 = arith.constant 0 : index
    %24 = vector.load %arg8[%c0_18, %c0_19] : memref<1x32xbf16, #tpu.memory_space<vmem>>, vector<1x32xbf16>
    %25 = arith.extf %24 : vector<1x32xbf16> to vector<1x32xf32>
    %26 = vector.broadcast %25 : vector<1x32xf32> to vector<112x32xf32>
    %27 = arith.mulf %23, %26 : vector<112x32xf32>
    %cst_20 = arith.constant dense<0.000000e+00> : vector<112xf32>
    %28 = vector.multi_reduction <add>, %27, %cst_20 [1] : vector<112x32xf32> to vector<112xf32>
    %29 = vector.shape_cast %28 : vector<112xf32> to vector<112x1xf32>
    %c0_21 = arith.constant 0 : index
    %c0_22 = arith.constant 0 : index
    %30 = vector.load %arg9[%c0_21, %c0_22] : memref<1x1xf32, #tpu.memory_space<vmem>>, vector<1x1xf32>
    %31 = vector.broadcast %30 : vector<1x1xf32> to vector<112x1xf32>
    %32 = arith.addf %29, %31 : vector<112x1xf32>
    %c0_23 = arith.constant 0 : index
    %c0_24 = arith.constant 0 : index
    %33 = vector.load %arg10[%c0_23, %c0_24] : memref<112x1xf32, #tpu.memory_space<vmem>>, vector<112x1xf32>
    tpu.vector_store %arg10[%c0_23, %c0_24], %32 {strides = array<i32>} : memref<112x1xf32, #tpu.memory_space<vmem>>, vector<112x1xf32>,
    return
  }
  func.func @transform_0(%arg0: i32) -> (i32, i32) {
    %c0_i32 = arith.constant 0 : i32
    %c0_i32_0 = arith.constant 0 : i32
    return %arg0, %c0_i32 : i32, i32
  }
  func.func @transform_1(%arg0: i32) -> (i32, i32) {
    %c0_i32 = arith.constant 0 : i32
    %c0_i32_0 = arith.constant 0 : i32
    %c0_i32_1 = arith.constant 0 : i32
    return %c0_i32, %c0_i32_0 : i32, i32
  }
  func.func @transform_2(%arg0: i32) -> (i32, i32) {
    %c0_i32 = arith.constant 0 : i32
    %c0_i32_0 = arith.constant 0 : i32
    %c0_i32_1 = arith.constant 0 : i32
    return %c0_i32, %c0_i32_0 : i32, i32
  }
  func.func @transform_3(%arg0: i32) -> (i32, i32) {
    %c0_i32 = arith.constant 0 : i32
    %c0_i32_0 = arith.constant 0 : i32
    %c0_i32_1 = arith.constant 0 : i32
    return %c0_i32, %c0_i32_0 : i32, i32
  }
  func.func @transform_4(%arg0: i32) -> (i32, i32) {
    %c0_i32 = arith.constant 0 : i32
    %c0_i32_0 = arith.constant 0 : i32
    %c0_i32_1 = arith.constant 0 : i32
    return %c0_i32, %c0_i32_0 : i32, i32
  }
  func.func @transform_5(%arg0: i32) -> (i32, i32) {
    %c0_i32 = arith.constant 0 : i32
    %c0_i32_0 = arith.constant 0 : i32
    %c0_i32_1 = arith.constant 0 : i32
    return %c0_i32, %c0_i32_0 : i32, i32
  }
  func.func @transform_6(%arg0: i32) -> (i32, i32) {
    %c0_i32 = arith.constant 0 : i32
    %c0_i32_0 = arith.constant 0 : i32
    %c0_i32_1 = arith.constant 0 : i32
    return %c0_i32, %c0_i32_0 : i32, i32
  }
  func.func @transform_7(%arg0: i32) -> (i32, i32) {
    %c0_i32 = arith.constant 0 : i32
    %c0_i32_0 = arith.constant 0 : i32
    %c0_i32_1 = arith.constant 0 : i32
    return %c0_i32, %c0_i32_0 : i32, i32
  }
  func.func @transform_8(%arg0: i32) -> (i32, i32) {
    %c0_i32 = arith.constant 0 : i32
    %c0_i32_0 = arith.constant 0 : i32
    %c0_i32_1 = arith.constant 0 : i32
    return %c0_i32, %c0_i32_0 : i32, i32
  }
  func.func @transform_9(%arg0: i32) -> (i32, i32) {
    %c0_i32 = arith.constant 0 : i32
    %c0_i32_0 = arith.constant 0 : i32
    return %arg0, %c0_i32 : i32, i32
  }
}

</mosaic_0001>

<bundles_post_ra>
// kernel: tpu_custom_call.1
= control target key start
LH: loop header
LB: loop body
LE: loop exit
PB: predicated region body
PF: predicated region fallthrough
CT: control target
= control target key end

     0   :  { %s1365_s11 = smov 0   ;;  %s1639_s0 = inlined_call_operand.vmem [shape: bf16[224,64], index: 0, kind: input, shape index: {}]   ;;  %s1640_s1 = inlined_call_operand.vmem [shape: bf16[64,128], index: 1, kind: input, shape index: {}]   ;;  %s1641_s2 = inlined_call_operand.vmem [shape: f32[1,128], index: 2, kind: input, shape index: {}]   ;;  %s1642_s3 = inlined_call_operand.vmem [shape: bf16[128,64], index: 3, kind: input, shape index: {}]   ;;  %s1643_s4 = inlined_call_operand.vmem [shape: f32[1,64], index: 4, kind: input, shape index: {}]   ;;  %s1644_s5 = inlined_call_operand.vmem [shape: bf16[64,32], index: 5, kind: input, shape index: {}]   ;;  %s1645_s6 = inlined_call_operand.vmem [shape: f32[1,32], index: 6, kind: input, shape index: {}]   ;;  %s1646_s7 = inlined_call_operand.vmem [shape: bf16[1,32], index: 7, kind: input, shape index: {}]   ;;  %s1647_s8 = inlined_call_operand.<no memory space> [shape: f32[1,1], index: 8, kind: input, shape index: {}]   ;;  %s1648_s9 = inlined_call_operand.vmem [shape: f32[224,1], index: 9, kind: output, shape index: {}]  }
   0x1   :  { %v14_v0 = vstv %s1647_s8 }
   0x2   :  { %15 = vst [vmem:[#allocation2] sm:$0x1] %v14_v0 }
   0x3 LB: > { %s1058_s12 = sadd.s32 4294967295, %s1308_s11   ;;  %p1062_p0 = scmp.ge.s32.totalorder %s1308_s11, 1  ;;  %s1308_s11 = sphi %s1365_s11, %s21_s11  }
   0x4   : > { %p290_p1 = scmp.lt.s32.totalorder %s1308_s11, 3 }
   0x6   : > { %p291_p2 = pnand %p1062_p0, %p290_p1 }
   0x7   : > { %v1279_v1 = vld [vmem:[%s1640_s1] sm:$0xff] (!%p291_p2)   ;;  %v1310_v2 = vmov (!%p291_p2), 0.0   ;;  %v1280_v3 = vld [vmem:[%s1640_s1 + $0x8] sm:$0xff] (!%p291_p2)   ;;  %vm1311_vm0 = vmmov (!%p291_p2), 0   ;;  %s326_s16 = smul.u32 (!%p291_p2), 14, %s1058_s12  ;;  %v1281_v4 = vld [vmem:[%s1640_s1 + $0x10] sm:$0xff] (!%p291_p2)  }
   0x8   : > { %294 = sbr.rel (%p291_p2) target bundleno = 878 (0x36e), region = 56  ;;  %1145 = vmatprep.subr.bf16.mxu0 (!%p291_p2), %v1310_v2  ;;  %1261 = vmatprep.subr.bf16.mxu1 (!%p291_p2), %v1310_v2  ;;  %v1282_v5 = vld [vmem:[%s1640_s1 + $0x18] sm:$0xff] (!%p291_p2)   ;;  %vm427_vm1 = vcmask (!%p291_p2), 523264   ;;  %v1290_v8 = vld [vmem:[%s1642_s3] sm:$0xff] (!%p291_p2)   ;;  %v1291_v9 = vld [vmem:[%s1642_s3 + $0x8] sm:$0xff] (!%p291_p2)   ;;  %vm923_vm2 = vcmask (!%p291_p2), 261120  }
   0x9   : > { %1146 = vmatpush3.bf16.msra.mxu0 (!%p291_p2), %v1279_v1  ;;  %1153 = vmatprep.mubr.msk.bf16.mxu0 (!%p291_p2), %vm1311_vm0, %v1310_v2  ;;  %p327_p3 = scmp.lt.s32.totalorder (!%p291_p2), %s326_s16, 27  ;;  %v1292_v12 = vld [vmem:[%s1642_s3 + $0x10] sm:$0xff] (!%p291_p2)   ;;  %v1293_v13 = vld [vmem:[%s1642_s3 + $0x18] sm:$0xff] (!%p291_p2)   ;;  %v1294_v16 = vld [vmem:[%s1642_s3 + $0x20] sm:$0xff] (!%p291_p2)   ;;  %vm987_vm3 = vcmask (!%p291_p2), 7168  }
   0xa   : > { %1147 = vmatprep.subr.bf16.mxu0 (!%p291_p2), %v1310_v2  ;;  %1265 = vmatpush3.bf16.msra.mxu1 (!%p291_p2), %v1279_v1  ;;  %v1295_v17 = vld [vmem:[%s1642_s3 + $0x28] sm:$0xff] (!%p291_p2)   ;;  %v1296_v19 = vld [vmem:[%s1642_s3 + $0x30] sm:$0xff] (!%p291_p2)   ;;  %v1297_v20 = vld [vmem:[%s1642_s3 + $0x38] sm:$0xff] (!%p291_p2)  }
   0xb   : > { %1262 = vmatprep.subr.bf16.mxu1 (!%p291_p2), %v1310_v2  ;;  %1165 = vmatprep.mubr.msk.bf16.mxu1 (!%p291_p2), %vm1311_vm0, %v1310_v2  ;;  %v1298_v21 = vld [vmem:[%s1644_s5] sm:$0xff] (!%p291_p2)   ;;  %v1299_v22 = vld [vmem:[%s1644_s5 + $0x8] sm:$0xff] (!%p291_p2)   ;;  %v1300_v23 = vld [vmem:[%s1644_s5 + $0x10] sm:$0xff] (!%p291_p2)  }
   0xc   : > { %v1481_v24 = vld [vmem:[%s1641_s2] ss:$0 sm:$0xff] (!%p291_p2) }
   0xd   : > { %1148 = vmatpush3.bf16.msra.mxu0 (!%p291_p2), %v1280_v3 }
   0xe   : > { %1149 = vmatprep.subr.bf16.mxu0 (!%p291_p2), %v1310_v2  ;;  %1266 = vmatpush3.bf16.msra.mxu1 (!%p291_p2), %v1280_v3 }
   0xf   : > { %s1650_s16 = smov (!%p327_p3, %s326_s16), 27  ;;  %1263 = vmatprep.subr.bf16.mxu1 %v1310_v2 }
  0x10   : > { %s1063_s19 = sshll.u32 %s1650_s16, 2  ;;  %s1064_s17 = sshll.u32 %s1650_s16, 3 }
  0x11   : > { %s1398_s22 = scalar_lea.vmem %s1639_s0, %s1063_s19  ;;  %1150 = vmatpush3.bf16.msra.mxu0 %v1281_v4  ;;  %s1606_s20 = scalar_lea.vmem %s1648_s9, %s1064_s17 }
  0x12   : > { %1151 = vmatprep.subr.bf16.mxu0 %v1310_v2  ;;  %1267 = vmatpush3.bf16.msra.mxu1 %v1281_v4  ;;  %v1283_v6 = vld [vmem:[%s1398_s22] sm:$0xff]   ;;  %v1286_v7 = vld [vmem:[%s1398_s22 + $0x18] sm:$0xff]   ;;  %v1284_v10 = vld [vmem:[%s1398_s22 + $0x8] sm:$0xff]  }
  0x13   : > { %1264 = vmatprep.subr.bf16.mxu1 %v1310_v2  ;;  %v1287_v11 = vld [vmem:[%s1398_s22 + $0x20] sm:$0xff]   ;;  %v1285_v14 = vld [vmem:[%s1398_s22 + $0x10] sm:$0xff]   ;;  %v1288_v15 = vld [vmem:[%s1398_s22 + $0x28] sm:$0xff]  }
  0x14   : > { %v1289_v18 = vld [vmem:[%s1398_s22 + $0x30] sm:$0xff]  }
  0x15   : > { %1152 = vmatpush3.bf16.msra.mxu0 %v1282_v5 }
  0x16   : > { %1268 = vmatpush3.bf16.msra.mxu1 %v1282_v5  ;;  %1225 = vmatprep.subr.bf16.mxu0 %v1310_v2 }
  0x17   : > { %1181 = vmatprep.subr.bf16.mxu1 %v1310_v2 }
  0x18   : > { %1154 = vmatmul.mubr.msk.bf16.vlgmr.msra.gmra.mrb[0].mxu0 %vm427_vm1, %v1283_v6 }
  0x19   : > { %1157 = vmatprep.mubr.msk.bf16.mxu0 %vm1311_vm0, %v1310_v2  ;;  %1166 = vmatmul.mubr.msk.bf16.vlgmr.msra.gmra.mrb[0].mxu1 %vm427_vm1, %v1286_v7 }
  0x1a   : > { %1169 = vmatprep.mubr.msk.bf16.mxu1 %vm1311_vm0, %v1310_v2  ;;  %1182 = vmatpush3.bf16.msra.mxu1 %v1290_v8 }
  0x1b   : > { %1183 = vmatprep.subr.bf16.mxu1 %v1310_v2  ;;  %1226 = vmatpush3.bf16.msra.mxu0 %v1298_v21 }
  0x1c   : > { %1227 = vmatprep.subr.bf16.mxu0 %v1310_v2 }
  0x1e   : > { %1184 = vmatpush3.bf16.msra.mxu1 %v1291_v9 }
  0x1f   : > { %1185 = vmatprep.subr.bf16.mxu1 %v1310_v2  ;;  %1228 = vmatpush3.bf16.msra.mxu0 %v1299_v22 }
  0x20   : > { %1158 = vmatmul.mubr.msk.bf16.gmra.mrb[4].mxu0 %vm427_vm1, %v1284_v10  ;;  %1229 = vmatprep.subr.bf16.mxu0 %v1310_v2 }
  0x21   : > { %1161 = vmatprep.mubr.msk.bf16.mxu0 %vm1311_vm0, %v1310_v2  ;;  %1170 = vmatmul.mubr.msk.bf16.gmra.mrb[4].mxu1 %vm427_vm1, %v1287_v11 }
  0x22   : > { %1173 = vmatprep.mubr.msk.bf16.mxu1 %vm1311_vm0, %v1310_v2  ;;  %1186 = vmatpush3.bf16.msra.mxu1 %v1292_v12 }
  0x23   : > { %1187 = vmatprep.subr.bf16.mxu1 %v1310_v2  ;;  %1230 = vmatpush3.bf16.msra.mxu0 %v1300_v23 }
  0x24   : > { %1231 = vmatprep.subr.bf16.mxu0 %v1310_v2 }
  0x26   : > { %1188 = vmatpush3.bf16.msra.mxu1 %v1293_v13 }
  0x27   : > { %1189 = vmatprep.subr.bf16.mxu1 %v1310_v2 }
  0x28   : > { %1162 = vmatmul.mubr.msk.bf16.gmra.mrb[8].mxu0 %vm427_vm1, %v1285_v14 }
  0x29   : > { %1174 = vmatmul.mubr.msk.bf16.gmra.mrb[8].mxu1 %vm427_vm1, %v1288_v15  ;;  %1233 = vmatprep.mubr.msk.bf16.mxu0 %vm1311_vm0, %v1310_v2 }
  0x2a   : > { %1177 = vmatprep.mubr.msk.bf16.mxu1 %vm1311_vm0, %v1310_v2  ;;  %1190 = vmatpush3.bf16.msra.mxu1 %v1294_v16 }
  0x2b   : > { %1191 = vmatprep.subr.bf16.mxu1 %v1310_v2 }
  0x2e   : > { %1192 = vmatpush3.bf16.msra.mxu1 %v1295_v17 }
  0x2f   : > { %1193 = vmatprep.subr.bf16.mxu1 %v1310_v2 }
  0x31   : > { %1178 = vmatmul.mubr.msk.bf16.gmra.mrb[12].mxu1 %vm427_vm1, %v1289_v18 }
  0x32   : > { %1197 = vmatprep.mubr.msk.bf16.mxu1 %vm1311_vm0, %v1310_v2  ;;  %1194 = vmatpush3.bf16.msra.mxu1 %v1296_v19 }
  0x33   : > { %1195 = vmatprep.subr.bf16.mxu1 %v1310_v2 }
  0x36   : > { %1196 = vmatpush3.bf16.msra.mxu1 %v1297_v20 }
  0xeb   : > { %v483_v25 = vpop.f32.mrb[0].mxu0 }
  0xec   : > { %v484_v26 = vadd.f32 %v1481_v24, %v483_v25  ;;  %v1155_v27 = vpop.f32.mrb[1].mxu0  ;;  %v507_v28 = vpop.f32.mrb[0].mxu1 }
  0xed   : > { %v486_v29 = vpop.f32.mrb[2].mxu0  ;;  %v508_v30 = vadd.f32 %v1481_v24, %v507_v28  ;;  %v1167_v31 = vpop.f32.mrb[1].mxu1 }
  0xee   : > { %v487_v32 = vadd.f32 %v1481_v24, %v486_v29  ;;  %v1156_v33 = vpop.f32.mrb[3].mxu0  ;;  %v510_v34 = vpop.f32.mrb[2].mxu1  ;;  %v538_v38 = vmax.f32 %v484_v26, 0.0  ;;  %v1515_v26 = vld [vmem:[%s1643_s4] ss:$0 sm:$0xff] }
  0xef   : > { %v544_v35 = vmax.f32 %v508_v30, 0.0  ;;  %v511_v36 = vadd.f32 %v1481_v24, %v510_v34  ;;  %v1168_v37 = vpop.f32.mrb[3].mxu1 }
  0xf0   : > { %v539_v39 = vmax.f32 %v487_v32, 0.0 }
  0xf1   : > { %v545_v40 = vmax.f32 %v511_v36, 0.0 }
  0xf2   : > { %v552_v41 = vpack.c.bf16 %v539_v39, %v538_v38 }
  0xf3   : > { %v491_v42 = vpop.f32.mrb[4].mxu0  ;;  %v555_v43 = vpack.c.bf16 %v545_v40, %v544_v35 }
  0xf4   : > { %v492_v44 = vadd.f32 %v1481_v24, %v491_v42  ;;  %v1159_v45 = vpop.f32.mrb[5].mxu0  ;;  %1198 = vmatmul.mubr.bf16.vlgmr.msra.gmra.mrb[16].mxu1 %v552_v41  ;;  %v515_v46 = vpop.f32.mrb[4].mxu1 }
  0xf5   : > { %v494_v47 = vpop.f32.mrb[6].mxu0  ;;  %1201 = vmatprep.mubr.msk.bf16.mxu1 %vm1311_vm0, %v1310_v2  ;;  %v516_v48 = vadd.f32 %v1481_v24, %v515_v46  ;;  %v1171_v49 = vpop.f32.mrb[5].mxu1 }
  0xf6   : > { %v495_v50 = vadd.f32 %v1481_v24, %v494_v47  ;;  %v1160_v51 = vpop.f32.mrb[7].mxu0  ;;  %v518_v52 = vpop.f32.mrb[6].mxu1  ;;  %v540_v56 = vmax.f32 %v492_v44, 0.0 }
  0xf7   : > { %v546_v53 = vmax.f32 %v516_v48, 0.0  ;;  %v519_v54 = vadd.f32 %v1481_v24, %v518_v52  ;;  %v1172_v55 = vpop.f32.mrb[7].mxu1 }
  0xf8   : > { %v541_v57 = vmax.f32 %v495_v50, 0.0 }
  0xf9   : > { %v547_v58 = vmax.f32 %v519_v54, 0.0 }
  0xfa   : > { %v553_v59 = vpack.c.bf16 %v541_v57, %v540_v56 }
  0xfb   : > { %v499_v60 = vpop.f32.mrb[8].mxu0  ;;  %v556_v61 = vpack.c.bf16 %v547_v58, %v546_v53 }
  0xfc   : > { %v500_v62 = vadd.f32 %v1481_v24, %v499_v60  ;;  %v1163_v63 = vpop.f32.mrb[9].mxu0  ;;  %1202 = vmatmul.mubr.bf16.gmra.mrb[20].mxu1 %v553_v59  ;;  %v523_v0 = vpop.f32.mrb[8].mxu1 }
  0xfd   : > { %v502_v1 = vpop.f32.mrb[10].mxu0  ;;  %1205 = vmatprep.mubr.msk.bf16.mxu1 %vm1311_vm0, %v1310_v2  ;;  %v524_v3 = vadd.f32 %v1481_v24, %v523_v0  ;;  %v1175_v4 = vpop.f32.mrb[9].mxu1 }
  0xfe   : > { %v503_v5 = vadd.f32 %v1481_v24, %v502_v1  ;;  %v1164_v6 = vpop.f32.mrb[11].mxu0  ;;  %v526_v7 = vpop.f32.mrb[10].mxu1  ;;  %v542_v11 = vmax.f32 %v500_v62, 0.0 }
  0xff   : > { %v548_v8 = vmax.f32 %v524_v3, 0.0  ;;  %v527_v9 = vadd.f32 %v1481_v24, %v526_v7  ;;  %v1176_v10 = vpop.f32.mrb[11].mxu1 }
 0x100   : > { %v543_v12 = vmax.f32 %v503_v5, 0.0 }
 0x101   : > { %v549_v13 = vmax.f32 %v527_v9, 0.0 }
 0x102   : > { %v554_v14 = vpack.c.bf16 %v543_v12, %v542_v11 }
 0x103   : > { %v557_v15 = vpack.c.bf16 %v549_v13, %v548_v8 }
 0x104   : > { %1206 = vmatmul.mubr.bf16.gmra.mrb[24].mxu1 %v554_v14  ;;  %v531_v16 = vpop.f32.mrb[12].mxu1 }
 0x105   : > { %1209 = vmatprep.mubr.msk.bf16.mxu1 %vm1311_vm0, %v1310_v2  ;;  %v532_v17 = vadd.f32 %v1481_v24, %v531_v16  ;;  %v1179_v18 = vpop.f32.mrb[13].mxu1 }
 0x106   : > { %v534_v19 = vpop.f32.mrb[14].mxu1 }
 0x107   : > { %v550_v20 = vmax.f32 %v532_v17, 0.0  ;;  %v535_v21 = vadd.f32 %v1481_v24, %v534_v19  ;;  %v1180_v22 = vpop.f32.mrb[15].mxu1  ;;  %v1301_v24 = vld [vmem:[%s1644_s5 + $0x18] sm:$0xff]  }
 0x108   : > { %1232 = vmatpush3.bf16.msra.mxu0 %v1301_v24 }
 0x109   : > { %v551_v23 = vmax.f32 %v535_v21, 0.0 }
 0x10b   : > { %v558_v25 = vpack.c.bf16 %v551_v23, %v550_v20 }
 0x10c   : > { %1210 = vmatmul.mubr.bf16.gmra.mrb[28].mxu1 %v555_v43 }
 0x10d   : > { %1213 = vmatprep.mubr.msk.bf16.mxu1 %vm1311_vm0, %v1310_v2 }
 0x114   : > { %1214 = vmatmul.mubr.bf16.gmra.mrb[32].mxu1 %v556_v61 }
 0x115   : > { %1217 = vmatprep.mubr.msk.bf16.mxu1 %vm1311_vm0, %v1310_v2 }
 0x11c   : > { %1218 = vmatmul.mubr.bf16.gmra.mrb[36].mxu1 %v557_v15 }
 0x11d   : > { %1221 = vmatprep.mubr.msk.bf16.mxu1 %vm1311_vm0, %v1310_v2 }
 0x124   : > { %1222 = vmatmul.mubr.bf16.gmra.mrb[40].mxu1 %v558_v25 }
 0x1c7   : > { %v664_v27 = vpop.f32.mrb[16].mxu1 }
 0x1c8   : > { %v665_v28 = vadd.f32 %v1515_v26, %v664_v27  ;;  %v1199_v29 = vpop.f32.mrb[17].mxu1 }
 0x1c9   : > { %v667_v30 = vpop.f32.mrb[18].mxu1 }
 0x1ca   : > { %v668_v31 = vadd.f32 %v1515_v26, %v667_v30  ;;  %v1200_v32 = vpop.f32.mrb[19].mxu1  ;;  %v719_v33 = vmax.f32 %v665_v28, 0.0  ;;  %v905_v28 = vlaneseq  ;;  %v903_v30 = vld [vmem:[%s1646_s7] sm:$0x1] }
 0x1cc   : > { %v720_v34 = vmax.f32 %v668_v31, 0.0  ;;  %v906_v29 = vshrl.u32 %v905_v28, 7  ;;  %v904_v31 = vunpack.c.l.bf16 %v903_v30 }
 0x1ce   : > { %v733_v35 = vpack.c.bf16 %v720_v34, %v719_v33  ;;  %v907_v32 = vsub.s32 0, %v906_v29 }
 0x1cf   : > { %v672_v36 = vpop.f32.mrb[20].mxu1 }
 0x1d0   : > { %v673_v37 = vadd.f32 %v1515_v26, %v672_v36  ;;  %v1203_v38 = vpop.f32.mrb[21].mxu1  ;;  %1234 = vmatmul.mubr.msk.bf16.vlgmr.msra.gmra.mrb[12].mxu0 %vm427_vm1, %v733_v35  ;;  %v1559_v35 = vrot.slane %v904_v31, %v907_v32 }
 0x1d1   : > { %v675_v39 = vpop.f32.mrb[22].mxu1  ;;  %1237 = vmatprep.mubr.msk.bf16.mxu0 %vm1311_vm0, %v1310_v2 }
 0x1d2   : > { %v676_v40 = vadd.f32 %v1515_v26, %v675_v39  ;;  %v1204_v41 = vpop.f32.mrb[23].mxu1  ;;  %v721_v42 = vmax.f32 %v673_v37, 0.0 }
 0x1d4   : > { %v722_v43 = vmax.f32 %v676_v40, 0.0 }
 0x1d6   : > { %v734_v44 = vpack.c.bf16 %v722_v43, %v721_v42 }
 0x1d7   : > { %v680_v45 = vpop.f32.mrb[24].mxu1 }
 0x1d8   : > { %v681_v46 = vadd.f32 %v1515_v26, %v680_v45  ;;  %v1207_v47 = vpop.f32.mrb[25].mxu1  ;;  %1238 = vmatmul.mubr.msk.bf16.gmra.mrb[16].mxu0 %vm427_vm1, %v734_v44 }
 0x1d9   : > { %v683_v48 = vpop.f32.mrb[26].mxu1  ;;  %1241 = vmatprep.mubr.msk.bf16.mxu0 %vm1311_vm0, %v1310_v2 }
 0x1da   : > { %v684_v49 = vadd.f32 %v1515_v26, %v683_v48  ;;  %v1208_v50 = vpop.f32.mrb[27].mxu1  ;;  %v723_v51 = vmax.f32 %v681_v46, 0.0 }
 0x1dc   : > { %v724_v52 = vmax.f32 %v684_v49, 0.0 }
 0x1de   : > { %v735_v53 = vpack.c.bf16 %v724_v52, %v723_v51 }
 0x1df   : > { %v688_v54 = vpop.f32.mrb[28].mxu1 }
 0x1e0   : > { %v689_v55 = vadd.f32 %v1515_v26, %v688_v54  ;;  %v1211_v56 = vpop.f32.mrb[29].mxu1  ;;  %1242 = vmatmul.mubr.msk.bf16.gmra.mrb[20].mxu0 %vm427_vm1, %v735_v53 }
 0x1e1   : > { %v691_v57 = vpop.f32.mrb[30].mxu1  ;;  %1245 = vmatprep.mubr.msk.bf16.mxu0 %vm1311_vm0, %v1310_v2 }
 0x1e2   : > { %v692_v58 = vadd.f32 %v1515_v26, %v691_v57  ;;  %v1212_v59 = vpop.f32.mrb[31].mxu1  ;;  %v725_v60 = vmax.f32 %v689_v55, 0.0 }
 0x1e4   : > { %v726_v61 = vmax.f32 %v692_v58, 0.0 }
 0x1e6   : > { %v736_v62 = vpack.c.bf16 %v726_v61, %v725_v60 }
 0x1e7   : > { %v696_v63 = vpop.f32.mrb[32].mxu1 }
 0x1e8   : > { %v697_v0 = vadd.f32 %v1515_v26, %v696_v63  ;;  %v1215_v1 = vpop.f32.mrb[33].mxu1  ;;  %1246 = vmatmul.mubr.msk.bf16.gmra.mrb[24].mxu0 %vm427_vm1, %v736_v62 }
 0x1e9   : > { %v699_v3 = vpop.f32.mrb[34].mxu1  ;;  %1249 = vmatprep.mubr.msk.bf16.mxu0 %vm1311_vm0, %v1310_v2 }
 0x1ea   : > { %v700_v4 = vadd.f32 %v1515_v26, %v699_v3  ;;  %v1216_v5 = vpop.f32.mrb[35].mxu1  ;;  %v727_v6 = vmax.f32 %v697_v0, 0.0 }
 0x1ec   : > { %v728_v7 = vmax.f32 %v700_v4, 0.0 }
 0x1ee   : > { %v737_v8 = vpack.c.bf16 %v728_v7, %v727_v6 }
 0x1ef   : > { %v704_v9 = vpop.f32.mrb[36].mxu1 }
 0x1f0   : > { %v705_v10 = vadd.f32 %v1515_v26, %v704_v9  ;;  %v1219_v11 = vpop.f32.mrb[37].mxu1  ;;  %1250 = vmatmul.mubr.msk.bf16.gmra.mrb[28].mxu0 %vm427_vm1, %v737_v8 }
 0x1f1   : > { %v707_v12 = vpop.f32.mrb[38].mxu1  ;;  %1253 = vmatprep.mubr.msk.bf16.mxu0 %vm1311_vm0, %v1310_v2 }
 0x1f2   : > { %v708_v13 = vadd.f32 %v1515_v26, %v707_v12  ;;  %v1220_v14 = vpop.f32.mrb[39].mxu1  ;;  %v729_v15 = vmax.f32 %v705_v10, 0.0 }
 0x1f4   : > { %v730_v16 = vmax.f32 %v708_v13, 0.0 }
 0x1f6   : > { %v738_v17 = vpack.c.bf16 %v730_v16, %v729_v15 }
 0x1f7   : > { %v712_v18 = vpop.f32.mrb[40].mxu1 }
 0x1f8   : > { %v713_v19 = vadd.f32 %v1515_v26, %v712_v18  ;;  %v1223_v20 = vpop.f32.mrb[41].mxu1  ;;  %1254 = vmatmul.mubr.msk.bf16.gmra.mrb[32].mxu0 %vm427_vm1, %v738_v17 }
 0x1f9   : > { %v715_v21 = vpop.f32.mrb[42].mxu1  ;;  %1257 = vmatprep.mubr.msk.bf16.mxu0 %vm1311_vm0, %v1310_v2  ;;  %v1556_v2 = vld [vmem:[%s1645_s6] ss:$0 sm:$0xff] }
 0x1fa   : > { %v716_v22 = vadd.f32 %v1515_v26, %v715_v21  ;;  %v1224_v23 = vpop.f32.mrb[43].mxu1  ;;  %v731_v25 = vmax.f32 %v713_v19, 0.0 }
 0x1fc   : > { %v732_v24 = vmax.f32 %v716_v22, 0.0 }
 0x1fe   : > { %v739_v27 = vpack.c.bf16 %v732_v24, %v731_v25 }
 0x200   : > { %1258 = vmatmul.mubr.msk.bf16.gmra.mrb[36].mxu0 %vm427_vm1, %v739_v27 }
 0x2a3   : > { %v834_v26 = vpop.f32.mrb[12].mxu0 }
 0x2a4   : > { %v835_v33 = vadd.f32 %v1556_v2, %v834_v26  ;;  %v1235_v34 = vpop.f32.mrb[13].mxu0 }
 0x2a5   : > { %v837_v36 = vpop.f32.mrb[14].mxu0 }
 0x2a6   : > { %v889_v37 = vmax.f32 %v835_v33, 0.0  ;;  %v838_v38 = vadd.f32 %v1556_v2, %v837_v36  ;;  %v1236_v39 = vpop.f32.mrb[15].mxu0 }
 0x2a8   : > { %v890_v40 = vmax.f32 %v838_v38, 0.0  ;;  %v909_v41 = vmul.f32 %v1559_v35, %v889_v37 }
 0x2aa   : > { %v924_v42 = vsel %vm923_vm2, %v909_v41, 0.0  ;;  %v910_v43 = vmul.f32 %v1559_v35, %v890_v40 }
 0x2ab   : > { %925 = vadd.xlane.f32.xlu0 %v924_v42  ;;  %v842_v44 = vpop.f32.mrb[16].mxu0 }
 0x2ac   : > { %v843_v45 = vadd.f32 %v1556_v2, %v842_v44  ;;  %v1239_v46 = vpop.f32.mrb[17].mxu0  ;;  %v927_v51 = vsel %vm923_vm2, %v910_v43, 0.0 }
 0x2ad   : > { %v845_v47 = vpop.f32.mrb[18].mxu0 }
 0x2ae   : > { %v891_v48 = vmax.f32 %v843_v45, 0.0  ;;  %v846_v49 = vadd.f32 %v1556_v2, %v845_v47  ;;  %v1240_v50 = vpop.f32.mrb[19].mxu0 }
 0x2af   : > { %928 = vadd.xlane.f32.xlu0 %v927_v51 }
 0x2b0   : > { %v892_v52 = vmax.f32 %v846_v49, 0.0  ;;  %v911_v53 = vmul.f32 %v1559_v35, %v891_v48 }
 0x2b2   : > { %v930_v54 = vsel %vm923_vm2, %v911_v53, 0.0  ;;  %v912_v55 = vmul.f32 %v1559_v35, %v892_v52 }
 0x2b3   : > { %931 = vadd.xlane.f32.xlu1 %v930_v54  ;;  %v850_v56 = vpop.f32.mrb[20].mxu0 }
 0x2b4   : > { %v851_v57 = vadd.f32 %v1556_v2, %v850_v56  ;;  %v1243_v58 = vpop.f32.mrb[21].mxu0  ;;  %v933_v63 = vsel %vm923_vm2, %v912_v55, 0.0  ;;  %v1105_v55 = vld [vmem:[#allocation2] ss:$0 sm:$0xff] }
 0x2b5   : > { %v853_v59 = vpop.f32.mrb[22].mxu0 }
 0x2b6   : > { %v893_v60 = vmax.f32 %v851_v57, 0.0  ;;  %v854_v61 = vadd.f32 %v1556_v2, %v853_v59  ;;  %v1244_v62 = vpop.f32.mrb[23].mxu0 }
 0x2b7   : > { %934 = vadd.xlane.f32.xlu1 %v933_v63 }
 0x2b8   : > { %v894_v0 = vmax.f32 %v854_v61, 0.0  ;;  %v913_v1 = vmul.f32 %v1559_v35, %v893_v60 }
 0x2ba   : > { %v936_v3 = vsel %vm923_vm2, %v913_v1, 0.0  ;;  %v914_v4 = vmul.f32 %v1559_v35, %v894_v0 }
 0x2bb   : > { %937 = vadd.xlane.f32.xlu0 %v936_v3  ;;  %v858_v5 = vpop.f32.mrb[24].mxu0 }
 0x2bc   : > { %v859_v6 = vadd.f32 %v1556_v2, %v858_v5  ;;  %v1247_v7 = vpop.f32.mrb[25].mxu0  ;;  %v939_v8 = vsel %vm923_vm2, %v914_v4, 0.0 }
 0x2bd   : > { %940 = vadd.xlane.f32.xlu1 %v939_v8  ;;  %v861_v9 = vpop.f32.mrb[26].mxu0 }
 0x2be   : > { %v895_v10 = vmax.f32 %v859_v6, 0.0  ;;  %v862_v11 = vadd.f32 %v1556_v2, %v861_v9  ;;  %v1248_v12 = vpop.f32.mrb[27].mxu0 }
 0x2c0   : > { %v896_v13 = vmax.f32 %v862_v11, 0.0  ;;  %v915_v14 = vmul.f32 %v1559_v35, %v895_v10 }
 0x2c2   : > { %v942_v15 = vsel %vm923_vm2, %v915_v14, 0.0  ;;  %v916_v16 = vmul.f32 %v1559_v35, %v896_v13 }
 0x2c3   : > { %943 = vadd.xlane.f32.xlu0 %v942_v15  ;;  %v866_v17 = vpop.f32.mrb[28].mxu0 }
 0x2c4   : > { %v867_v18 = vadd.f32 %v1556_v2, %v866_v17  ;;  %v1251_v19 = vpop.f32.mrb[29].mxu0  ;;  %v945_v20 = vsel %vm923_vm2, %v916_v16, 0.0 }
 0x2c5   : > { %946 = vadd.xlane.f32.xlu1 %v945_v20  ;;  %v869_v21 = vpop.f32.mrb[30].mxu0 }
 0x2c6   : > { %v897_v22 = vmax.f32 %v867_v18, 0.0  ;;  %v870_v23 = vadd.f32 %v1556_v2, %v869_v21  ;;  %v1252_v25 = vpop.f32.mrb[31].mxu0 }
 0x2c8   : > { %v898_v24 = vmax.f32 %v870_v23, 0.0  ;;  %v917_v27 = vmul.f32 %v1559_v35, %v897_v22 }
 0x2ca   : > { %v948_v28 = vsel %vm923_vm2, %v917_v27, 0.0  ;;  %v918_v29 = vmul.f32 %v1559_v35, %v898_v24 }
 0x2cb   : > { %949 = vadd.xlane.f32.xlu0 %v948_v28  ;;  %v874_v30 = vpop.f32.mrb[32].mxu0 }
 0x2cc   : > { %v875_v31 = vadd.f32 %v1556_v2, %v874_v30  ;;  %v1255_v32 = vpop.f32.mrb[33].mxu0  ;;  %v951_v26 = vsel %vm923_vm2, %v918_v29, 0.0 }
 0x2cd   : > { %952 = vadd.xlane.f32.xlu1 %v951_v26  ;;  %v877_v33 = vpop.f32.mrb[34].mxu0 }
 0x2ce   : > { %v899_v34 = vmax.f32 %v875_v31, 0.0  ;;  %v878_v36 = vadd.f32 %v1556_v2, %v877_v33  ;;  %v1256_v37 = vpop.f32.mrb[35].mxu0 }
 0x2d0   : > { %v900_v38 = vmax.f32 %v878_v36, 0.0  ;;  %v919_v39 = vmul.f32 %v1559_v35, %v899_v34 }
 0x2d2   : > { %v954_v40 = vsel %vm923_vm2, %v919_v39, 0.0  ;;  %v920_v41 = vmul.f32 %v1559_v35, %v900_v38 }
 0x2d3   : > { %955 = vadd.xlane.f32.xlu0 %v954_v40  ;;  %v882_v42 = vpop.f32.mrb[36].mxu0 }
 0x2d4   : > { %v883_v43 = vadd.f32 %v1556_v2, %v882_v42  ;;  %v1259_v44 = vpop.f32.mrb[37].mxu0  ;;  %v957_v45 = vsel %vm923_vm2, %v920_v41, 0.0 }
 0x2d5   : > { %958 = vadd.xlane.f32.xlu1 %v957_v45  ;;  %v885_v46 = vpop.f32.mrb[38].mxu0 }
 0x2d6   : > { %v901_v47 = vmax.f32 %v883_v43, 0.0  ;;  %v886_v48 = vadd.f32 %v1556_v2, %v885_v46  ;;  %v1260_v49 = vpop.f32.mrb[39].mxu0 }
 0x2d8   : > { %v902_v50 = vmax.f32 %v886_v48, 0.0  ;;  %v921_v51 = vmul.f32 %v1559_v35, %v901_v47 }
 0x2da   : > { %v960_v52 = vsel %vm923_vm2, %v921_v51, 0.0  ;;  %v922_v53 = vmul.f32 %v1559_v35, %v902_v50 }
 0x2db   : > { %961 = vadd.xlane.f32.xlu0 %v960_v52 }
 0x2dc   : > { %v963_v54 = vsel %vm923_vm2, %v922_v53, 0.0 }
 0x2dd   : > { %964 = vadd.xlane.f32.xlu1 %v963_v54 }
 0x338   : > { %v926_v2 = vpop.xlane.xlu0 %925 }
 0x339   : > { %v973_v56 = vadd.f32 %v1105_v55, %v926_v2 }
 0x33b   : > { %988 = vst.msk [vmem:[%s1606_s20] sm:$0xff] %vm987_vm3, %v973_v56 }
 0x33c   : > { %v929_v35 = vpop.xlane.xlu0 %928 }
 0x33d   : > { %v974_v57 = vadd.f32 %v1105_v55, %v929_v35 }
 0x33f   : > { %989 = vst.msk [vmem:[%s1606_s20 + $0x8] sm:$0xff] %vm987_vm3, %v974_v57 }
 0x340   : > { %v932_v58 = vpop.xlane.xlu1 %931 }
 0x341   : > { %v975_v59 = vadd.f32 %v1105_v55, %v932_v58 }
 0x343   : > { %990 = vst.msk [vmem:[%s1606_s20 + $0x10] sm:$0xff] %vm987_vm3, %v975_v59 }
 0x344   : > { %v935_v60 = vpop.xlane.xlu1 %934 }
 0x345   : > { %v976_v61 = vadd.f32 %v1105_v55, %v935_v60 }
 0x347   : > { %991 = vst.msk [vmem:[%s1606_s20 + $0x18] sm:$0xff] %vm987_vm3, %v976_v61 }
 0x348   : > { %v938_v62 = vpop.xlane.xlu0 %937 }
 0x349   : > { %v977_v63 = vadd.f32 %v1105_v55, %v938_v62 }
 0x34a   : > { %v941_v0 = vpop.xlane.xlu1 %940 }
 0x34b   : > { %992 = vst.msk [vmem:[%s1606_s20 + $0x20] sm:$0xff] %vm987_vm3, %v977_v63  ;;  %v978_v1 = vadd.f32 %v1105_v55, %v941_v0 }
 0x34d   : > { %993 = vst.msk [vmem:[%s1606_s20 + $0x28] sm:$0xff] %vm987_vm3, %v978_v1 }
 0x350   : > { %v944_v3 = vpop.xlane.xlu0 %943 }
 0x351   : > { %v979_v4 = vadd.f32 %v1105_v55, %v944_v3 }
 0x352   : > { %v947_v5 = vpop.xlane.xlu1 %946 }
 0x353   : > { %994 = vst.msk [vmem:[%s1606_s20 + $0x30] sm:$0xff] %vm987_vm3, %v979_v4  ;;  %v980_v6 = vadd.f32 %v1105_v55, %v947_v5 }
 0x355   : > { %995 = vst.msk [vmem:[%s1606_s20 + $0x38] sm:$0xff] %vm987_vm3, %v980_v6 }
 0x358   : > { %v950_v7 = vpop.xlane.xlu0 %949 }
 0x359   : > { %v981_v8 = vadd.f32 %v1105_v55, %v950_v7 }
 0x35a   : > { %v953_v9 = vpop.xlane.xlu1 %952 }
 0x35b   : > { %996 = vst.msk [vmem:[%s1606_s20 + $0x40] sm:$0xff] %vm987_vm3, %v981_v8  ;;  %v982_v10 = vadd.f32 %v1105_v55, %v953_v9 }
 0x35d   : > { %997 = vst.msk [vmem:[%s1606_s20 + $0x48] sm:$0xff] %vm987_vm3, %v982_v10 }
 0x360   : > { %v956_v11 = vpop.xlane.xlu0 %955 }
 0x361   : > { %v983_v12 = vadd.f32 %v1105_v55, %v956_v11 }
 0x362   : > { %v959_v13 = vpop.xlane.xlu1 %958 }
 0x363   : > { %998 = vst.msk [vmem:[%s1606_s20 + $0x50] sm:$0xff] %vm987_vm3, %v983_v12  ;;  %v984_v14 = vadd.f32 %v1105_v55, %v959_v13 }
 0x365   : > { %999 = vst.msk [vmem:[%s1606_s20 + $0x58] sm:$0xff] %vm987_vm3, %v984_v14 }
 0x368   : > { %v962_v15 = vpop.xlane.xlu0 %961 }
 0x369   : > { %v985_v16 = vadd.f32 %v1105_v55, %v962_v15 }
 0x36a   : > { %v965_v17 = vpop.xlane.xlu1 %964 }
 0x36b   : > { %1000 = vst.msk [vmem:[%s1606_s20 + $0x60] sm:$0xff] %vm987_vm3, %v985_v16  ;;  %v986_v18 = vadd.f32 %v1105_v55, %v965_v17 }
 0x36d   : > { %1001 = vst.msk [vmem:[%s1606_s20 + $0x68] sm:$0xff] %vm987_vm3, %v986_v18 }
 0x36e PF: > { %s21_s11 = sadd.s32 1, %s1308_s11  }
 0x36f   : > { %p18_p4 = scmp.ge.s32.totalorder %s21_s11, 4  }
 0x371   :  { %20 = sbr.rel (!%p18_p4) target bundleno = 3 (0x3), region = 86 }

</bundles_post_ra>
